<compile_context>
chip_gen: v7x
topology: tpu7x:2x2x1
jax: 0.10.0
libtpu: 0.0.40
codegen_flags: <defaults>
</compile_context>

<pallas_src>
import jax
import jax.numpy as jnp
import numpy as np
from jax.experimental import pallas as pl
from jax.experimental.pallas import tpu as pltpu


def _round_up(x, m):
    return (x + m - 1) // m * m


def _ppr_kernel(x_ref, f_ref, th_ref, y_ref, p_ref):
    # x_ref : [TM, D]   batch tile (last block may contain row-local garbage)
    # f_ref : [D, LP]   stacked filters, transposed, zero-padded lanes
    # th_ref: [2, LP]   theta transposed, zero-padded lanes
    # y_ref : [TM, LO]  per-layer readouts (first L lanes are real)
    # p_ref : [TM, 1]   sum over layers
    xw = jnp.dot(x_ref[...], f_ref[...], preferred_element_type=jnp.float32)
    t0 = th_ref[0:1, :]                       # [1, LP], broadcasts over rows
    t1 = th_ref[1:2, :]
    y = xw * (t0 + t1 * xw)                   # Horner form of t0*y + t1*y^2
    y_ref[...] = y[:, : y_ref.shape[-1]]      # packed per-layer writeback
    # Padded lanes are exact zeros -> lane sum == sum over the real L layers.
    p_ref[...] = jnp.sum(y, axis=-1, keepdims=True)


def _prepare_params(F, theta):
    F = jnp.asarray(F, jnp.float32)            # [L, D]
    theta = jnp.asarray(theta, jnp.float32)    # [L, 2]
    L, D = F.shape
    LP = _round_up(L, 128)                     # lane-dense layer dim for MXU
    Ft = jnp.pad(jnp.transpose(F), ((0, 0), (0, LP - L)))       # [D, LP]
    Tt = jnp.pad(jnp.transpose(theta), ((0, 0), (0, LP - L)))   # [2, LP]
    return Ft, Tt, L, D, LP


def _tile_rows(n):
    # ~2048-row tiles; for large N pick <= N/2 so the grid has >= 2 blocks
    # and the "parallel" axis can shard across TensorCores.
    half = -(-n // 2)
    return max(8, min(2048, _round_up(half, 8)))


@jax.jit
def ppr_all(X, F, theta):
    """Fused call: returns (Y [N, L] per-layer readouts, pred [N] layer sum)."""
    X = jnp.asarray(X, jnp.float32)
    Ft, Tt, L, D, LP = _prepare_params(F, theta)
    N = X.shape[0]
    LO = _round_up(L, 8)                       # packed per-layer output lanes
    TM = _tile_rows(N)
    grid = (pl.cdiv(N, TM),)

    cost = pl.CostEstimate(
        flops=2 * N * D * LP + 4 * N * LP,
        transcendentals=0,
        bytes_accessed=4 * (N * D + D * LP + 2 * LP + N * LO + N),
    )

    y, p = pl.pallas_call(
        _ppr_kernel,
        out_shape=(
            jax.ShapeDtypeStruct((N, LO), jnp.float32),
            jax.ShapeDtypeStruct((N, 1), jnp.float32),
        ),
        grid_spec=pl.GridSpec(
            grid=grid,
            in_specs=[
                pl.BlockSpec((TM, D), lambda i: (i, 0)),   # X tile (pipelined)
                pl.BlockSpec((D, LP), lambda i: (0, 0)),   # filters, resident
                pl.BlockSpec((2, LP), lambda i: (0, 0)),   # theta, resident
            ],
            out_specs=(
                pl.BlockSpec((TM, LO), lambda i: (i, 0)),
                pl.BlockSpec((TM, 1), lambda i: (i, 0)),
            ),
        ),
        compiler_params=pltpu.CompilerParams(
            dimension_semantics=("parallel",)),
        cost_estimate=cost,
    )(X, Ft, Tt)
    return y[:, :L], p[:, 0]


def ppr_layer_outputs(X, F, theta):
    """Per-layer outputs Y [N, L]: forward(X, l) == Y[:, l]."""
    return ppr_all(X, F, theta)[0]


def ppr_forward(X, F, theta, layer):
    return ppr_all(X, F, theta)[0][:, layer]


def ppr_predict(X, F, theta, ind_set=None):
    Y, pred = ppr_all(X, F, theta)
    if ind_set is None:
        return pred
    return Y[:, jnp.asarray(list(ind_set), dtype=jnp.int32)].sum(axis=1)


# TODO(synk): evaluate/eval_func/reorder (pearsonr-based host-side unit pruning)
# is control logic outside the forward pass and is not translated to a kernel.


if __name__ == "__main__":
    # Module hyper-parameters (match PyTorch defaults), small batch.
    input_size = 20
    nlayers = 3
    N = 8
    D = input_size * input_size  # 400

    # Deterministic parameter init, exactly as in PPR.__init__:
    #   filter[i] = 0.01 * ones(input_size**2),  theta[i] = [0.01, 0.01]
    F = 0.01 * jnp.ones((nlayers, D), dtype=jnp.float32)
    theta = 0.01 * jnp.ones((nlayers, 2), dtype=jnp.float32)

    # Deterministic input.
    X = jax.random.normal(jax.random.PRNGKey(0), (N, D), dtype=jnp.float32)

    # Run the fused Pallas kernel once; derive all module outputs from it.
    Y, pred = ppr_all(X, F, theta)
    Y = jax.block_until_ready(Y)
    pred = jax.block_until_ready(pred)
    fwd0 = jax.block_until_ready(ppr_forward(X, F, theta, 0))
    pred_sub = jax.block_until_ready(ppr_predict(X, F, theta, ind_set=[1, 2]))

    # Pure-numpy reference (mirrors the PyTorch forward exactly).
    Xn = np.asarray(X)
    Fn = np.asarray(F)
    Tn = np.asarray(theta)
    ref_layers = []
    for l in range(nlayers):
        y = Xn @ Fn[l]
        ref_layers.append(Tn[l, 0] * y + Tn[l, 1] * y ** 2)
    ref_Y = np.stack(ref_layers, axis=1)

    assert np.allclose(np.asarray(Y), ref_Y, rtol=1e-5, atol=1e-5)
    assert np.allclose(np.asarray(pred), ref_Y.sum(axis=1), rtol=1e-5, atol=1e-5)
    assert np.allclose(np.asarray(fwd0), ref_Y[:, 0], rtol=1e-5, atol=1e-5)
    assert np.allclose(np.asarray(pred_sub), ref_Y[:, 1:].sum(axis=1),
                       rtol=1e-5, atol=1e-5)

    print("KERNEL_OK")
</pallas_src>

<mosaic_0001>
module attributes {stable_mosaic.version = 11 : i64} {
  func.func @_ppr_kernel(%arg0: i32, %arg1: memref<8x400xf32, #tpu.memory_space<vmem>>, %arg2: memref<400x128xf32, #tpu.memory_space<vmem>>, %arg3: memref<2x128xf32, #tpu.memory_space<vmem>>, %arg4: memref<8x8xf32, #tpu.memory_space<vmem>>, %arg5: memref<8x1xf32, #tpu.memory_space<vmem>>) attributes {dimension_semantics = [#tpu.dimension_semantics<parallel>], iteration_bounds = array<i64: 1>, scalar_prefetch = 0 : i64, scratch_operands = 0 : i64, tpu.core_type = #tpu.core_type<tc>, window_params = [{transform_indices = @transform_0, window_bounds = array<i64: 8, 400>}, {pipeline_mode = #tpu.pipeline_mode<synchronous>, transform_indices = @transform_1, window_bounds = array<i64: 400, 128>}, {pipeline_mode = #tpu.pipeline_mode<synchronous>, transform_indices = @transform_2, window_bounds = array<i64: 2, 128>}, {transform_indices = @transform_3, window_bounds = array<i64: 8, 8>}, {transform_indices = @transform_4, window_bounds = array<i64: 8, 1>}]} {
    %c0 = arith.constant 0 : index
    %c0_0 = arith.constant 0 : index
    %0 = vector.load %arg1[%c0, %c0_0] : memref<8x400xf32, #tpu.memory_space<vmem>>, vector<8x400xf32>
    %c0_1 = arith.constant 0 : index
    %c0_2 = arith.constant 0 : index
    %1 = vector.load %arg2[%c0_1, %c0_2] : memref<400x128xf32, #tpu.memory_space<vmem>>, vector<400x128xf32>
    %cst = arith.constant dense<0.000000e+00> : vector<8x128xf32>
    %2 = tpu.matmul %0, %1, %cst {dimension_numbers = #tpu.dot_dimension_numbers<[1], [0], [0], [1], [0, 0, 1, 1], [], []>} : vector<8x400xf32>, vector<400x128xf32>, vector<8x128xf32> -> vector<8x128xf32>
    %c0_3 = arith.constant 0 : index
    %c0_4 = arith.constant 0 : index
    %3 = vector.load %arg3[%c0_3, %c0_4] : memref<2x128xf32, #tpu.memory_space<vmem>>, vector<1x128xf32>
    %c1 = arith.constant 1 : index
    %c0_5 = arith.constant 0 : index
    %4 = vector.load %arg3[%c1, %c0_5] : memref<2x128xf32, #tpu.memory_space<vmem>>, vector<1x128xf32>
    %5 = vector.broadcast %4 : vector<1x128xf32> to vector<8x128xf32>
    %6 = arith.mulf %5, %2 : vector<8x128xf32>
    %7 = vector.broadcast %3 : vector<1x128xf32> to vector<8x128xf32>
    %8 = arith.addf %7, %6 : vector<8x128xf32>
    %9 = arith.mulf %2, %8 : vector<8x128xf32>
    %10 = vector.extract_strided_slice %9 {offsets = [0, 0], sizes = [8, 8], strides = [1, 1]} : vector<8x128xf32> to vector<8x8xf32>
    %c0_6 = arith.constant 0 : index
    %c0_7 = arith.constant 0 : index
    %11 = vector.load %arg4[%c0_6, %c0_7] : memref<8x8xf32, #tpu.memory_space<vmem>>, vector<8x8xf32>
    tpu.vector_store %arg4[%c0_6, %c0_7], %10 {strides = array<i32>} : memref<8x8xf32, #tpu.memory_space<vmem>>, vector<8x8xf32>,
    %cst_8 = arith.constant dense<0.000000e+00> : vector<8xf32>
    %12 = vector.multi_reduction <add>, %9, %cst_8 [1] : vector<8x128xf32> to vector<8xf32>
    %13 = vector.shape_cast %12 : vector<8xf32> to vector<8x1xf32>
    %c0_9 = arith.constant 0 : index
    %c0_10 = arith.constant 0 : index
    %14 = vector.load %arg5[%c0_9, %c0_10] : memref<8x1xf32, #tpu.memory_space<vmem>>, vector<8x1xf32>
    tpu.vector_store %arg5[%c0_9, %c0_10], %13 {strides = array<i32>} : memref<8x1xf32, #tpu.memory_space<vmem>>, vector<8x1xf32>,
    return
  }
  func.func @transform_0(%arg0: i32) -> (i32, i32) {
    %c0_i32 = arith.constant 0 : i32
    %c0_i32_0 = arith.constant 0 : i32
    return %arg0, %c0_i32 : i32, i32
  }
  func.func @transform_1(%arg0: i32) -> (i32, i32) {
    %c0_i32 = arith.constant 0 : i32
    %c0_i32_0 = arith.constant 0 : i32
    %c0_i32_1 = arith.constant 0 : i32
    return %c0_i32, %c0_i32_0 : i32, i32
  }
  func.func @transform_2(%arg0: i32) -> (i32, i32) {
    %c0_i32 = arith.constant 0 : i32
    %c0_i32_0 = arith.constant 0 : i32
    %c0_i32_1 = arith.constant 0 : i32
    return %c0_i32, %c0_i32_0 : i32, i32
  }
  func.func @transform_3(%arg0: i32) -> (i32, i32) {
    %c0_i32 = arith.constant 0 : i32
    %c0_i32_0 = arith.constant 0 : i32
    return %arg0, %c0_i32 : i32, i32
  }
  func.func @transform_4(%arg0: i32) -> (i32, i32) {
    %c0_i32 = arith.constant 0 : i32
    %c0_i32_0 = arith.constant 0 : i32
    return %arg0, %c0_i32 : i32, i32
  }
}

</mosaic_0001>

<bundles_post_ra>
// kernel: ppr_all.1
= control target key start
LH: loop header
LB: loop body
LE: loop exit
PB: predicated region body
PF: predicated region fallthrough
CT: control target
= control target key end

     0   :  { %v339_v0 = vmov 0.0|0.0   ;;  %vm70_vm0 = vcmask 130048   ;;  %vm227_vm1 = vcmask 64512   ;;  %vm231_vm2 = vcmask 7168   ;;  %s549_s1 = inlined_call_operand.vmem [shape: f32[400,128], index: 1, kind: input, shape index: {}]   ;;  %s550_s0 = inlined_call_operand.vmem [shape: f32[8,400], index: 0, kind: input, shape index: {}]   ;;  %s551_s2 = inlined_call_operand.vmem [shape: f32[2,128], index: 2, kind: input, shape index: {}]   ;;  %s552_s3 = inlined_call_operand.vmem [shape: f32[8,8], index: 3, kind: output, shape index: {0}]   ;;  %s553_s4 = inlined_call_operand.vmem [shape: f32[8,1], index: 4, kind: output, shape index: {1}]  }
   0x1   :  { %311 = vmatprep.subr.bf16.mxu1 %v339_v0  ;;  %v36_v1 = vld [vmem:[%s549_s1 + $0x80] sm:$0xff]  ;;  %v37_v2 = vld [vmem:[%s549_s1 + $0x88] sm:$0xff]  ;;  %v38_v10 = vld [vmem:[%s549_s1 + $0x90] sm:$0xff] }
   0x2   :  { %v52_v3 = vld [vmem:[%s549_s1 + $0x100] sm:$0xff]  ;;  %v279_v4 = vpack.c.bf16 %v37_v2, %v36_v1  ;;  %v53_v5 = vld [vmem:[%s549_s1 + $0x108] sm:$0xff]  ;;  %v39_v11 = vld [vmem:[%s549_s1 + $0x98] sm:$0xff] }
   0x3   :  { %v20_v6 = vld [vmem:[%s549_s1] sm:$0xff]  ;;  %v21_v7 = vld [vmem:[%s549_s1 + $0x8] sm:$0xff]  ;;  %v312_v8 = vpack.c.bf16 %v53_v5, %v52_v3  ;;  %v54_v12 = vld [vmem:[%s549_s1 + $0x110] sm:$0xff]  ;;  %v283_v13 = vpack.c.bf16 %v39_v11, %v38_v10 }
   0x4   :  { %v281_v9 = vpack.c.bf16 %v21_v7, %v20_v6  ;;  %280 = vmatprep.subr.bf16.mxu0 %v279_v4  ;;  %v55_v14 = vld [vmem:[%s549_s1 + $0x118] sm:$0xff]  ;;  %v22_v15 = vld [vmem:[%s549_s1 + $0x10] sm:$0xff]  ;;  %v40_v19 = vld [vmem:[%s549_s1 + $0xa0] sm:$0xff] }
   0x5   :  { %v23_v16 = vld [vmem:[%s549_s1 + $0x18] sm:$0xff]  ;;  %313 = vmatpush1.bf16.msra.mxu1 %v312_v8  ;;  %v315_v17 = vpack.c.bf16 %v55_v14, %v54_v12  ;;  %v41_v20 = vld [vmem:[%s549_s1 + $0xa8] sm:$0xff]  ;;  %v56_v21 = vld [vmem:[%s549_s1 + $0x120] sm:$0xff] }
   0x6   :  { %282 = vmatpush3.bf16.msra.mxu0 %v281_v9  ;;  %v285_v18 = vpack.c.bf16 %v23_v16, %v22_v15  ;;  %314 = vmatprep.subr.bf16.mxu1 %v339_v0  ;;  %v287_v22 = vpack.c.bf16 %v41_v20, %v40_v19  ;;  %v57_v23 = vld [vmem:[%s549_s1 + $0x128] sm:$0xff]  ;;  %v24_v24 = vld [vmem:[%s549_s1 + $0x20] sm:$0xff]  ;;  %v42_v26 = vld [vmem:[%s549_s1 + $0xb0] sm:$0xff] }
   0x7   :  { %284 = vmatprep.subr.bf16.mxu0 %v283_v13  ;;  %v25_v25 = vld [vmem:[%s549_s1 + $0x28] sm:$0xff]  ;;  %v43_v27 = vld [vmem:[%s549_s1 + $0xb8] sm:$0xff]  ;;  %v318_v28 = vpack.c.bf16 %v57_v23, %v56_v21  ;;  %v58_v30 = vld [vmem:[%s549_s1 + $0x130] sm:$0xff] }
   0x8   :  { %v289_v29 = vpack.c.bf16 %v25_v25, %v24_v24  ;;  %v291_v31 = vpack.c.bf16 %v43_v27, %v42_v26  ;;  %v59_v32 = vld [vmem:[%s549_s1 + $0x138] sm:$0xff]  ;;  %v26_v33 = vld [vmem:[%s549_s1 + $0x30] sm:$0xff]  ;;  %v44_v35 = vld [vmem:[%s549_s1 + $0xc0] sm:$0xff] }
   0x9   :  { %316 = vmatpush1.bf16.msra.mxu1 %v315_v17  ;;  %v27_v34 = vld [vmem:[%s549_s1 + $0x38] sm:$0xff]  ;;  %v45_v36 = vld [vmem:[%s549_s1 + $0xc8] sm:$0xff]  ;;  %v321_v37 = vpack.c.bf16 %v59_v32, %v58_v30  ;;  %v60_v39 = vld [vmem:[%s549_s1 + $0x140] sm:$0xff] }
   0xa   :  { %286 = vmatpush3.bf16.msra.mxu0 %v285_v18  ;;  %317 = vmatprep.subr.bf16.mxu1 %v339_v0  ;;  %v293_v38 = vpack.c.bf16 %v27_v34, %v26_v33  ;;  %v295_v40 = vpack.c.bf16 %v45_v36, %v44_v35  ;;  %v61_v41 = vld [vmem:[%s549_s1 + $0x148] sm:$0xff]  ;;  %v28_v42 = vld [vmem:[%s549_s1 + $0x40] sm:$0xff]  ;;  %v46_v44 = vld [vmem:[%s549_s1 + $0xd0] sm:$0xff] }
   0xb   :  { %288 = vmatprep.subr.bf16.mxu0 %v287_v22  ;;  %v29_v43 = vld [vmem:[%s549_s1 + $0x48] sm:$0xff]  ;;  %v47_v45 = vld [vmem:[%s549_s1 + $0xd8] sm:$0xff]  ;;  %v324_v46 = vpack.c.bf16 %v61_v41, %v60_v39  ;;  %v62_v48 = vld [vmem:[%s549_s1 + $0x150] sm:$0xff] }
   0xc   :  { %v297_v47 = vpack.c.bf16 %v29_v43, %v28_v42  ;;  %v63_v49 = vld [vmem:[%s549_s1 + $0x158] sm:$0xff]  ;;  %v17_v50 = vld [vmem:[%s550_s0 + $0x8] sm:$0xff]  ;;  %v299_v51 = vpack.c.bf16 %v47_v45, %v46_v44  ;;  %v30_v52 = vld [vmem:[%s549_s1 + $0x50] sm:$0xff] }
   0xd   :  { %319 = vmatpush1.bf16.msra.mxu1 %v318_v28  ;;  %v31_v53 = vld [vmem:[%s549_s1 + $0x58] sm:$0xff]  ;;  %v48_v55 = vld [vmem:[%s549_s1 + $0xe0] sm:$0xff]  ;;  %v49_v56 = vld [vmem:[%s549_s1 + $0xe8] sm:$0xff]  ;;  %138 = vmatprep.mubr.f32.mxu0 %v17_v50  ;;  %v327_v57 = vpack.c.bf16 %v63_v49, %v62_v48 }
   0xe   :  { %290 = vmatpush3.bf16.msra.mxu0 %v289_v29  ;;  %320 = vmatprep.subr.bf16.mxu1 %v339_v0  ;;  %v19_v54 = vld [vmem:[%s550_s0 + $0x18] sm:$0xff]  ;;  %v301_v58 = vpack.c.bf16 %v31_v53, %v30_v52  ;;  %v64_v59 = vld [vmem:[%s549_s1 + $0x160] sm:$0xff]  ;;  %v303_v60 = vpack.c.bf16 %v49_v56, %v48_v55  ;;  %v65_v61 = vld [vmem:[%s549_s1 + $0x168] sm:$0xff] }
   0xf   :  { %292 = vmatprep.subr.bf16.mxu0 %v291_v31  ;;  %241 = vmatprep.mubr.msk.f32.mxu1 %vm70_vm0, %v19_v54  ;;  %v32_v62 = vld [vmem:[%s549_s1 + $0x60] sm:$0xff]  ;;  %v33_v63 = vld [vmem:[%s549_s1 + $0x68] sm:$0xff]  ;;  %v50_v1 = vld [vmem:[%s549_s1 + $0xf0] sm:$0xff]  ;;  %v330_v3 = vpack.c.bf16 %v65_v61, %v64_v59 }
  0x10   :  { %v51_v2 = vld [vmem:[%s549_s1 + $0xf8] sm:$0xff]  ;;  %v305_v4 = vpack.c.bf16 %v33_v63, %v32_v62  ;;  %v66_v5 = vld [vmem:[%s549_s1 + $0x170] sm:$0xff]  ;;  %v68_v12 = vld [vmem:[%s549_s1 + $0x180] sm:$0xff] }
  0x11   :  { %322 = vmatpush1.bf16.msra.mxu1 %v321_v37  ;;  %v307_v6 = vpack.c.bf16 %v51_v2, %v50_v1  ;;  %v67_v7 = vld [vmem:[%s549_s1 + $0x178] sm:$0xff]  ;;  %v34_v8 = vld [vmem:[%s549_s1 + $0x70] sm:$0xff]  ;;  %v69_v13 = vld [vmem:[%s549_s1 + $0x188] sm:$0xff] }
  0x12   :  { %294 = vmatpush3.bf16.msra.mxu0 %v293_v38  ;;  %323 = vmatprep.subr.bf16.mxu1 %v339_v0  ;;  %v35_v9 = vld [vmem:[%s549_s1 + $0x78] sm:$0xff]  ;;  %v333_v10 = vpack.c.bf16 %v67_v7, %v66_v5  ;;  %v16_v14 = vld [vmem:[%s550_s0] sm:$0xff]  ;;  %v336_v15 = vpack.c.bf16 %v69_v13, %v68_v12  ;;  %v18_v16 = vld [vmem:[%s550_s0 + $0x10] sm:$0xff] }
  0x13   :  { %296 = vmatprep.subr.bf16.mxu0 %v295_v40  ;;  %v309_v11 = vpack.c.bf16 %v35_v9, %v34_v8  ;;  %v242_v21 = vld [vmem:[%s551_s2 + $0x1] ss:$0 sm:$0xff] }
  0x15   :  { %325 = vmatpush1.bf16.msra.mxu1 %v324_v46 }
  0x16   :  { %298 = vmatpush3.bf16.msra.mxu0 %v297_v47  ;;  %326 = vmatprep.subr.bf16.mxu1 %v339_v0 }
  0x17   :  { %300 = vmatprep.subr.bf16.mxu0 %v299_v51 }
  0x19   :  { %328 = vmatpush1.bf16.msra.mxu1 %v327_v57 }
  0x1a   :  { %302 = vmatpush3.bf16.msra.mxu0 %v301_v58  ;;  %329 = vmatprep.subr.bf16.mxu1 %v339_v0 }
  0x1b   :  { %304 = vmatprep.subr.bf16.mxu0 %v303_v60 }
  0x1d   :  { %331 = vmatpush1.bf16.msra.mxu1 %v330_v3 }
  0x1e   :  { %306 = vmatpush3.bf16.msra.mxu0 %v305_v4  ;;  %332 = vmatprep.subr.bf16.mxu1 %v339_v0 }
  0x1f   :  { %308 = vmatprep.subr.bf16.mxu0 %v307_v6 }
  0x21   :  { %334 = vmatpush1.bf16.msra.mxu1 %v333_v10 }
  0x22   :  { %310 = vmatpush3.bf16.msra.mxu0 %v309_v11  ;;  %335 = vmatprep.subr.bf16.mxu1 %v339_v0  ;;  %v243_v0 = vld [vmem:[%s551_s2] ss:$0 sm:$0xff] }
  0x25   :  { %139 = vmatmul.mubr.f32.vlgmr.msra.gmra.mrb[0].mxu0 %v16_v14  ;;  %337 = vmatpush1.bf16.msra.mxu1 %v336_v15 }
  0x28   :  { %209 = vmatmul.mubr.f32.vlgmr.msra.gmra.mrb[0].mxu1 %v18_v16 }
  0xf8   :  { %v276_v17 = vpop.f32.mrb[0].mxu0 }
  0xf9   :  { %v277_v18 = vpop.f32.mrb[1].mxu0 }
  0xfa   :  { %v278_v19 = vadd.f32 %v277_v18, %v276_v17 }
  0xfb   :  { %v210_v20 = vpop.f32.mrb[0].mxu1 }
  0xfc   :  { %v211_v22 = vadd.f32 %v278_v19, %v210_v20  ;;  %v212_v23 = vpop.f32.mrb[1].mxu1 }
  0xfe   :  { %v220_v24 = vmul.f32 %v242_v21, %v211_v22 }
 0x100   :  { %v225_v25 = vadd.f32 %v243_v0, %v220_v24 }
 0x102   :  { %v226_v26 = vmul.f32 %v225_v25, %v211_v22 }
 0x104   :  { %228 = vst.msk [vmem:[%s552_s3] sm:$0xff] %vm227_vm1, %v226_v26  ;;  %229 = vadd.xlane.f32.xlu0 %v226_v26 }
 0x191   :  { %v230_v27 = vpop.xlane.xlu0 %229 }
 0x192   :  { %232 = vst.msk [vmem:[%s553_s4] sm:$0xff] %vm231_vm2, %v230_v27 }

</bundles_post_ra>
